<compile_context>
chip_gen: v5e
topology: v5e:2x2
jax: 0.10.0
libtpu: 0.0.40
codegen_flags: <defaults>
</compile_context>

<pallas_src>
import functools

import jax
import jax.numpy as jnp
from jax import lax
from jax.experimental import pallas as pl
from jax.experimental.pallas import tpu as pltpu

NEG_SLOPE = 0.01                               # nn.LeakyReLU() default
BN_EPS = 1e-5                                  # nn.BatchNorm2d default
NEG_FILL = float(jnp.finfo(jnp.float32).min)   # max-pool padding (never selected)


# ----------------------------------------------------------------------------
# Fused conv + BN-affine + LeakyReLU + 3x3/s2/p1 max-pool kernel
# ----------------------------------------------------------------------------
def _make_cbrp_kernel(kh, stride, hp, wpc, cout):
    """One image per grid step. Static dims closed over."""

    def kernel(x_ref, w_ref, bias_ref, o_ref):
        # x_ref:    (Hpad, Wpad*Cin)        padded input, (W, C) folded into lanes
        # w_ref:    (kh, Wpad*Cin, 2*wpc)   banded weights [even conv cols | odd]
        # bias_ref: (1, 2*wpc)              fused conv+BN bias, tiled per column
        # o_ref:    (hp, wpc)               pooled output, (Wp, Cout) folded
        f32 = jnp.float32
        acc_e = jnp.zeros((hp, 2 * wpc), f32)   # conv rows 2*hp   (pool-even rows)
        acc_o = jnp.zeros((hp, 2 * wpc), f32)   # conv rows 2*hp+1 (pool-odd rows)
        for ki in range(kh):
            a_e = x_ref[pl.ds(ki, hp, stride=2 * stride), :]
            a_o = x_ref[pl.ds(ki + stride, hp, stride=2 * stride), :]
            w_k = w_ref[ki]
            acc_e += jnp.dot(a_e, w_k, preferred_element_type=f32)
            acc_o += jnp.dot(a_o, w_k, preferred_element_type=f32)

        # epilogue: fused (conv bias + BN) affine, then LeakyReLU — all f32
        bias = bias_ref[...].astype(f32)
        y_e = acc_e + bias
        y_e = jnp.where(y_e >= 0.0, y_e, NEG_SLOPE * y_e)
        y_o = acc_o + bias
        y_o = jnp.where(y_o >= 0.0, y_o, NEG_SLOPE * y_o)

        # split even / odd conv columns (separate GEMM column halves)
        y_ee, y_eo = y_e[:, :wpc], y_e[:, wpc:]
        y_oe, y_oo = y_o[:, :wpc], y_o[:, wpc:]

        fill_col = jnp.full((hp, cout), NEG_FILL, f32)
        fill_row = jnp.full((1, wpc), NEG_FILL, f32)

        def shift_col(y):   # pooled col wp <- odd conv col (wp-1); col 0 = pool pad
            return jnp.concatenate([fill_col, y[:, :wpc - cout]], axis=1)

        def shift_row(y):   # pooled row hp <- odd conv row (hp-1); row 0 = pool pad
            return jnp.concatenate([fill_row, y[:hp - 1, :]], axis=0)

        # 3x3 / stride-2 / pad-1 max-pool = max over 9 parity-shifted views
        m = jnp.maximum(y_ee, y_eo)
        m = jnp.maximum(m, shift_col(y_eo))
        m = jnp.maximum(m, y_oe)
        m = jnp.maximum(m, y_oo)
        m = jnp.maximum(m, shift_col(y_oo))
        oe_up = shift_row(y_oe)
        oo_up = shift_row(y_oo)
        m = jnp.maximum(m, oe_up)
        m = jnp.maximum(m, oo_up)
        m = jnp.maximum(m, shift_col(oo_up))

        o_ref[...] = m.astype(o_ref.dtype)

    return kernel


# ----------------------------------------------------------------------------
# Wrapper-side weight preparation (one-time, O(K*N), not per-element work)
# ----------------------------------------------------------------------------
def _banded_conv_weights(wt, *, stride, parity, wpad, wp, wout):
    """Block-Toeplitz GEMM weights: (Wpad*Cin) lanes -> (Wp*Cout) lanes.

    Output column group j corresponds to conv output column jc = 2*j + parity.
    wt: (kh, kw, Cin, Cout), BN scale already folded in.
    """
    kh, kw, cin, cout = wt.shape
    w_idx = jnp.arange(wpad)
    jc = 2 * jnp.arange(wp) + parity
    valid = jc < wout
    bands = []
    for ki in range(kh):
        b_ki = jnp.zeros((wpad, cin, wp, cout), wt.dtype)
        for kj in range(kw):
            sel = (w_idx[:, None] == stride * jc[None, :] + kj) & valid[None, :]
            b_ki = b_ki + jnp.einsum("wj,co->wcjo", sel.astype(wt.dtype), wt[ki, kj])
        bands.append(b_ki.reshape(wpad * cin, wp * cout))
    return jnp.stack(bands, axis=0)             # (kh, Wpad*Cin, Wp*Cout)


@functools.partial(jax.jit, static_argnames=("stride", "pad", "compute_dtype"))
def cbrp_forward(x, conv_w, conv_b, gamma, beta, run_mean, run_var, *,
                 stride, pad, compute_dtype=jnp.float32):
    """x: (N, C, H, W) or (N, T, C, H, W), PyTorch NCHW convention."""
    is_5d = x.ndim == 5
    if is_5d:
        N, T, C0, H0, W0 = x.shape
        x = x.reshape(N * T, C0, H0, W0)
    NT, Cin, H, W = x.shape
    Cout, Cin_w, kh, kw = conv_w.shape
    assert Cin_w == Cin and kh == kw

    Hout = (H + 2 * pad - kh) // stride + 1
    Wout = (W + 2 * pad - kw) // stride + 1
    assert Hout % 2 == 0 and Wout % 2 == 0, "fused pool path needs even conv dims"
    Hp, Wp = Hout // 2, Wout // 2               # MaxPool2d(3, 2, 1), floor mode
    wpc = Wp * Cout

    # Fold BatchNorm (running stats) + conv bias into a per-channel affine,
    # and fold the BN scale straight into the conv weights (drops a VPU mul
    # and one input stream from the kernel).
    bn_scale = gamma / jnp.sqrt(run_var + BN_EPS)
    w_fold = conv_w * bn_scale[:, None, None, None]
    fused_bias = beta + (conv_b - run_mean) * bn_scale

    # NCHW -> NHWC, conv-pad, fold (W, C) into the lane dimension.
    x_nhwc = jnp.transpose(x, (0, 2, 3, 1))
    xp = jnp.pad(x_nhwc, ((0, 0), (pad, pad), (pad, pad), (0, 0)))
    Hpad, Wpad = H + 2 * pad, W + 2 * pad
    x2 = xp.reshape(NT, Hpad, Wpad * Cin).astype(compute_dtype)

    # Banded GEMM weights: even conv columns in the first Wp*Cout output
    # lanes, odd conv columns in the next Wp*Cout lanes (128 lanes total here).
    wt = jnp.transpose(w_fold, (2, 3, 1, 0))    # (kh, kw, Cin, Cout)
    b_even = _banded_conv_weights(wt, stride=stride, parity=0,
                                  wpad=Wpad, wp=Wp, wout=Wout)
    b_odd = _banded_conv_weights(wt, stride=stride, parity=1,
                                 wpad=Wpad, wp=Wp, wout=Wout)
    w_cat = jnp.concatenate([b_even, b_odd], axis=2).astype(compute_dtype)
    bias_tile = jnp.tile(fused_bias, 2 * Wp).reshape(1, 2 * wpc).astype(jnp.float32)

    kernel = _make_cbrp_kernel(kh, stride, Hp, wpc, Cout)
    out = pl.pallas_call(
        kernel,
        out_shape=jax.ShapeDtypeStruct((NT, Hp, wpc), jnp.float32),
        grid_spec=pltpu.PrefetchScalarGridSpec(
            num_scalar_prefetch=0,
            grid=(NT,),
            in_specs=[
                pl.BlockSpec((None, Hpad, Wpad * Cin), lambda n: (n, 0, 0)),
                pl.BlockSpec((kh, Wpad * Cin, 2 * wpc), lambda n: (0, 0, 0)),
                pl.BlockSpec((1, 2 * wpc), lambda n: (0, 0)),
            ],
            out_specs=pl.BlockSpec((None, Hp, wpc), lambda n: (n, 0, 0)),
        ),
        compiler_params=pltpu.CompilerParams(
            dimension_semantics=("parallel",)),
    )(x2, w_cat, bias_tile)

    out = out.reshape(NT, Hp, Wp, Cout)
    out = jnp.transpose(out, (0, 3, 1, 2))      # back to NCHW
    if is_5d:
        out = out.reshape(N, T, Cout, Hp, Wp)
    return out


# ----------------------------------------------------------------------------
# Pure-JAX reference (for correctness check)
# ----------------------------------------------------------------------------
def cbrp_reference(x, conv_w, conv_b, gamma, beta, run_mean, run_var, *, stride, pad):
    is_5d = x.ndim == 5
    if is_5d:
        N, T, C, H, W = x.shape
        x = x.reshape(N * T, C, H, W)
    y = lax.conv_general_dilated(
        x, conv_w, (stride, stride), [(pad, pad), (pad, pad)],
        dimension_numbers=("NCHW", "OIHW", "NCHW"))
    y = y + conv_b[None, :, None, None]
    y = (gamma[None, :, None, None] * (y - run_mean[None, :, None, None])
         / jnp.sqrt(run_var[None, :, None, None] + BN_EPS)
         + beta[None, :, None, None])
    y = jnp.where(y >= 0.0, y, NEG_SLOPE * y)
    y = lax.reduce_window(
        y, -jnp.inf, lax.max,
        window_dimensions=(1, 1, 3, 3), window_strides=(1, 1, 2, 2),
        padding=((0, 0), (0, 0), (1, 1), (1, 1)))
    if is_5d:
        Cout, Hp, Wp = y.shape[1:]
        y = y.reshape(N, T, Cout, Hp, Wp)
    return y


if __name__ == "__main__":
    # CBRP(in_f=4, out_f=8, k_size=3, stride=1, padd=1, bn=True, relu=True, pool=True)
    in_f, out_f, k_size, stride, padd = 4, 8, 3, 1, 1

    key = jax.random.PRNGKey(0)
    k1, k2, k3, k4, k5, k6, k7 = jax.random.split(key, 7)
    conv_w = jax.random.normal(k1, (out_f, in_f, k_size, k_size), jnp.float32) * 0.1
    conv_b = jax.random.normal(k2, (out_f,), jnp.float32) * 0.1
    gamma = 1.0 + 0.1 * jax.random.normal(k3, (out_f,), jnp.float32)
    beta = 0.1 * jax.random.normal(k4, (out_f,), jnp.float32)
    run_mean = 0.1 * jax.random.normal(k5, (out_f,), jnp.float32)
    run_var = jnp.abs(jax.random.normal(k6, (out_f,), jnp.float32)) + 0.5

    x = jax.random.normal(k7, (2, 4, 16, 16), jnp.float32)   # [N, C, H, W]

    out = cbrp_forward(x, conv_w, conv_b, gamma, beta, run_mean, run_var,
                       stride=stride, pad=padd)
    out = jax.block_until_ready(out)
    ref = cbrp_reference(x, conv_w, conv_b, gamma, beta, run_mean, run_var,
                         stride=stride, pad=padd)
    ref = jax.block_until_ready(ref)
    assert out.shape == (2, out_f, 8, 8), out.shape
    assert jnp.allclose(out, ref, atol=1e-3, rtol=1e-3), \
        float(jnp.max(jnp.abs(out - ref)))

    # 5-D [N, T, C, H, W] path
    x5 = x.reshape(1, 2, 4, 16, 16)
    out5 = jax.block_until_ready(
        cbrp_forward(x5, conv_w, conv_b, gamma, beta, run_mean, run_var,
                     stride=stride, pad=padd))
    ref5 = cbrp_reference(x5, conv_w, conv_b, gamma, beta, run_mean, run_var,
                          stride=stride, pad=padd)
    assert out5.shape == (1, 2, out_f, 8, 8), out5.shape
    assert jnp.allclose(out5, ref5, atol=1e-3, rtol=1e-3)

    print("KERNEL_OK")
</pallas_src>

<mosaic_0001>
module attributes {stable_mosaic.version = 11 : i64} {
  func.func @kernel(%arg0: i32, %arg1: memref<1x18x72xf32, #tpu.memory_space<vmem>>, %arg2: memref<3x72x128xf32, #tpu.memory_space<vmem>>, %arg3: memref<1x128xf32, #tpu.memory_space<vmem>>, %arg4: memref<1x8x64xf32, #tpu.memory_space<vmem>>) attributes {dimension_semantics = [#tpu.dimension_semantics<parallel>], iteration_bounds = array<i64: 2>, scalar_prefetch = 0 : i64, scratch_operands = 0 : i64, tpu.core_type = #tpu.core_type<tc>, window_params = [{transform_indices = @transform_0, window_bounds = array<i64: 1, 18, 72>}, {pipeline_mode = #tpu.pipeline_mode<synchronous>, transform_indices = @transform_1, window_bounds = array<i64: 3, 72, 128>}, {pipeline_mode = #tpu.pipeline_mode<synchronous>, transform_indices = @transform_2, window_bounds = array<i64: 1, 128>}, {transform_indices = @transform_3, window_bounds = array<i64: 1, 8, 64>}]} {
    %cst = arith.constant 0.000000e+00 : f32
    %0 = vector.broadcast %cst : f32 to vector<8x128xf32>
    %cst_0 = arith.constant 0.000000e+00 : f32
    %1 = vector.broadcast %cst_0 : f32 to vector<8x128xf32>
    %c0 = arith.constant 0 : index
    %c0_1 = arith.constant 0 : index
    %c0_2 = arith.constant 0 : index
    %2 = tpu.strided_load %arg1[%c0, %c0_1, %c0_2] {strides = array<i32: 1, 2, 1>} : memref<1x18x72xf32, #tpu.memory_space<vmem>>, vector<1x8x72xf32>
    %3 = vector.shape_cast %2 : vector<1x8x72xf32> to vector<8x72xf32>
    %c0_3 = arith.constant 0 : index
    %c1 = arith.constant 1 : index
    %c0_4 = arith.constant 0 : index
    %4 = tpu.strided_load %arg1[%c0_3, %c1, %c0_4] {strides = array<i32: 1, 2, 1>} : memref<1x18x72xf32, #tpu.memory_space<vmem>>, vector<1x8x72xf32>
    %5 = vector.shape_cast %4 : vector<1x8x72xf32> to vector<8x72xf32>
    %c0_5 = arith.constant 0 : index
    %c0_6 = arith.constant 0 : index
    %c0_7 = arith.constant 0 : index
    %6 = vector.load %arg2[%c0_5, %c0_6, %c0_7] : memref<3x72x128xf32, #tpu.memory_space<vmem>>, vector<1x72x128xf32>
    %7 = vector.shape_cast %6 : vector<1x72x128xf32> to vector<72x128xf32>
    %cst_8 = arith.constant dense<0.000000e+00> : vector<8x128xf32>
    %8 = tpu.matmul %3, %7, %cst_8 {dimension_numbers = #tpu.dot_dimension_numbers<[1], [0], [0], [1], [0, 0, 1, 1], [], []>} : vector<8x72xf32>, vector<72x128xf32>, vector<8x128xf32> -> vector<8x128xf32>
    %9 = arith.addf %0, %8 : vector<8x128xf32>
    %cst_9 = arith.constant dense<0.000000e+00> : vector<8x128xf32>
    %10 = tpu.matmul %5, %7, %cst_9 {dimension_numbers = #tpu.dot_dimension_numbers<[1], [0], [0], [1], [0, 0, 1, 1], [], []>} : vector<8x72xf32>, vector<72x128xf32>, vector<8x128xf32> -> vector<8x128xf32>
    %11 = arith.addf %1, %10 : vector<8x128xf32>
    %c0_10 = arith.constant 0 : index
    %c1_11 = arith.constant 1 : index
    %c0_12 = arith.constant 0 : index
    %12 = tpu.strided_load %arg1[%c0_10, %c1_11, %c0_12] {strides = array<i32: 1, 2, 1>} : memref<1x18x72xf32, #tpu.memory_space<vmem>>, vector<1x8x72xf32>
    %13 = vector.shape_cast %12 : vector<1x8x72xf32> to vector<8x72xf32>
    %c0_13 = arith.constant 0 : index
    %c2 = arith.constant 2 : index
    %c0_14 = arith.constant 0 : index
    %14 = tpu.strided_load %arg1[%c0_13, %c2, %c0_14] {strides = array<i32: 1, 2, 1>} : memref<1x18x72xf32, #tpu.memory_space<vmem>>, vector<1x8x72xf32>
    %15 = vector.shape_cast %14 : vector<1x8x72xf32> to vector<8x72xf32>
    %c1_15 = arith.constant 1 : index
    %c0_16 = arith.constant 0 : index
    %c0_17 = arith.constant 0 : index
    %16 = vector.load %arg2[%c1_15, %c0_16, %c0_17] : memref<3x72x128xf32, #tpu.memory_space<vmem>>, vector<1x72x128xf32>
    %17 = vector.shape_cast %16 : vector<1x72x128xf32> to vector<72x128xf32>
    %cst_18 = arith.constant dense<0.000000e+00> : vector<8x128xf32>
    %18 = tpu.matmul %13, %17, %cst_18 {dimension_numbers = #tpu.dot_dimension_numbers<[1], [0], [0], [1], [0, 0, 1, 1], [], []>} : vector<8x72xf32>, vector<72x128xf32>, vector<8x128xf32> -> vector<8x128xf32>
    %19 = arith.addf %9, %18 : vector<8x128xf32>
    %cst_19 = arith.constant dense<0.000000e+00> : vector<8x128xf32>
    %20 = tpu.matmul %15, %17, %cst_19 {dimension_numbers = #tpu.dot_dimension_numbers<[1], [0], [0], [1], [0, 0, 1, 1], [], []>} : vector<8x72xf32>, vector<72x128xf32>, vector<8x128xf32> -> vector<8x128xf32>
    %21 = arith.addf %11, %20 : vector<8x128xf32>
    %c0_20 = arith.constant 0 : index
    %c2_21 = arith.constant 2 : index
    %c0_22 = arith.constant 0 : index
    %22 = tpu.strided_load %arg1[%c0_20, %c2_21, %c0_22] {strides = array<i32: 1, 2, 1>} : memref<1x18x72xf32, #tpu.memory_space<vmem>>, vector<1x8x72xf32>
    %23 = vector.shape_cast %22 : vector<1x8x72xf32> to vector<8x72xf32>
    %c0_23 = arith.constant 0 : index
    %c3 = arith.constant 3 : index
    %c0_24 = arith.constant 0 : index
    %24 = tpu.strided_load %arg1[%c0_23, %c3, %c0_24] {strides = array<i32: 1, 2, 1>} : memref<1x18x72xf32, #tpu.memory_space<vmem>>, vector<1x8x72xf32>
    %25 = vector.shape_cast %24 : vector<1x8x72xf32> to vector<8x72xf32>
    %c2_25 = arith.constant 2 : index
    %c0_26 = arith.constant 0 : index
    %c0_27 = arith.constant 0 : index
    %26 = vector.load %arg2[%c2_25, %c0_26, %c0_27] : memref<3x72x128xf32, #tpu.memory_space<vmem>>, vector<1x72x128xf32>
    %27 = vector.shape_cast %26 : vector<1x72x128xf32> to vector<72x128xf32>
    %cst_28 = arith.constant dense<0.000000e+00> : vector<8x128xf32>
    %28 = tpu.matmul %23, %27, %cst_28 {dimension_numbers = #tpu.dot_dimension_numbers<[1], [0], [0], [1], [0, 0, 1, 1], [], []>} : vector<8x72xf32>, vector<72x128xf32>, vector<8x128xf32> -> vector<8x128xf32>
    %29 = arith.addf %19, %28 : vector<8x128xf32>
    %cst_29 = arith.constant dense<0.000000e+00> : vector<8x128xf32>
    %30 = tpu.matmul %25, %27, %cst_29 {dimension_numbers = #tpu.dot_dimension_numbers<[1], [0], [0], [1], [0, 0, 1, 1], [], []>} : vector<8x72xf32>, vector<72x128xf32>, vector<8x128xf32> -> vector<8x128xf32>
    %31 = arith.addf %21, %30 : vector<8x128xf32>
    %c0_30 = arith.constant 0 : index
    %c0_31 = arith.constant 0 : index
    %32 = vector.load %arg3[%c0_30, %c0_31] : memref<1x128xf32, #tpu.memory_space<vmem>>, vector<1x128xf32>
    %33 = vector.broadcast %32 : vector<1x128xf32> to vector<8x128xf32>
    %34 = arith.addf %29, %33 : vector<8x128xf32>
    %cst_32 = arith.constant 0.000000e+00 : f32
    %35 = vector.broadcast %cst_32 : f32 to vector<8x128xf32>
    %36 = arith.cmpf oge, %34, %35 : vector<8x128xf32>
    %cst_33 = arith.constant 0.00999999977 : f32
    %37 = vector.broadcast %cst_33 : f32 to vector<8x128xf32>
    %38 = arith.mulf %37, %34 : vector<8x128xf32>
    %39 = arith.select %36, %34, %38 : vector<8x128xi1>, vector<8x128xf32>
    %40 = vector.broadcast %32 : vector<1x128xf32> to vector<8x128xf32>
    %41 = arith.addf %31, %40 : vector<8x128xf32>
    %cst_34 = arith.constant 0.000000e+00 : f32
    %42 = vector.broadcast %cst_34 : f32 to vector<8x128xf32>
    %43 = arith.cmpf oge, %41, %42 : vector<8x128xf32>
    %cst_35 = arith.constant 0.00999999977 : f32
    %44 = vector.broadcast %cst_35 : f32 to vector<8x128xf32>
    %45 = arith.mulf %44, %41 : vector<8x128xf32>
    %46 = arith.select %43, %41, %45 : vector<8x128xi1>, vector<8x128xf32>
    %47 = vector.extract_strided_slice %39 {offsets = [0, 0], sizes = [8, 64], strides = [1, 1]} : vector<8x128xf32> to vector<8x64xf32>
    %48 = vector.extract_strided_slice %39 {offsets = [0, 64], sizes = [8, 64], strides = [1, 1]} : vector<8x128xf32> to vector<8x64xf32>
    %49 = vector.extract_strided_slice %46 {offsets = [0, 0], sizes = [8, 64], strides = [1, 1]} : vector<8x128xf32> to vector<8x64xf32>
    %50 = vector.extract_strided_slice %46 {offsets = [0, 64], sizes = [8, 64], strides = [1, 1]} : vector<8x128xf32> to vector<8x64xf32>
    %cst_36 = arith.constant -3.40282347E+38 : f32
    %51 = vector.broadcast %cst_36 : f32 to vector<8x8xf32>
    %cst_37 = arith.constant -3.40282347E+38 : f32
    %52 = vector.broadcast %cst_37 : f32 to vector<1x64xf32>
    %53 = arith.maximumf %47, %48 : vector<8x64xf32>
    %54 = vector.extract_strided_slice %48 {offsets = [0, 0], sizes = [8, 56], strides = [1, 1]} : vector<8x64xf32> to vector<8x56xf32>
    %55 = tpu.concatenate %51, %54 in 1 : vector<8x8xf32>, vector<8x56xf32> -> vector<8x64xf32>
    %56 = arith.maximumf %53, %55 : vector<8x64xf32>
    %57 = arith.maximumf %56, %49 : vector<8x64xf32>
    %58 = arith.maximumf %57, %50 : vector<8x64xf32>
    %59 = vector.extract_strided_slice %50 {offsets = [0, 0], sizes = [8, 56], strides = [1, 1]} : vector<8x64xf32> to vector<8x56xf32>
    %60 = tpu.concatenate %51, %59 in 1 : vector<8x8xf32>, vector<8x56xf32> -> vector<8x64xf32>
    %61 = arith.maximumf %58, %60 : vector<8x64xf32>
    %62 = vector.extract_strided_slice %49 {offsets = [0, 0], sizes = [7, 64], strides = [1, 1]} : vector<8x64xf32> to vector<7x64xf32>
    %63 = tpu.concatenate %52, %62 in 0 : vector<1x64xf32>, vector<7x64xf32> -> vector<8x64xf32>
    %64 = vector.extract_strided_slice %50 {offsets = [0, 0], sizes = [7, 64], strides = [1, 1]} : vector<8x64xf32> to vector<7x64xf32>
    %65 = tpu.concatenate %52, %64 in 0 : vector<1x64xf32>, vector<7x64xf32> -> vector<8x64xf32>
    %66 = arith.maximumf %61, %63 : vector<8x64xf32>
    %67 = arith.maximumf %66, %65 : vector<8x64xf32>
    %68 = vector.extract_strided_slice %65 {offsets = [0, 0], sizes = [8, 56], strides = [1, 1]} : vector<8x64xf32> to vector<8x56xf32>
    %69 = tpu.concatenate %51, %68 in 1 : vector<8x8xf32>, vector<8x56xf32> -> vector<8x64xf32>
    %70 = arith.maximumf %67, %69 : vector<8x64xf32>
    %c0_38 = arith.constant 0 : index
    %c0_39 = arith.constant 0 : index
    %c0_40 = arith.constant 0 : index
    %71 = vector.load %arg4[%c0_38, %c0_39, %c0_40] : memref<1x8x64xf32, #tpu.memory_space<vmem>>, vector<1x8x64xf32>
    %72 = vector.shape_cast %71 : vector<1x8x64xf32> to vector<8x64xf32>
    %73 = vector.shape_cast %70 : vector<8x64xf32> to vector<1x8x64xf32>
    tpu.vector_store %arg4[%c0_38, %c0_39, %c0_40], %73 {strides = array<i32>} : memref<1x8x64xf32, #tpu.memory_space<vmem>>, vector<1x8x64xf32>,
    return
  }
  func.func @transform_0(%arg0: i32) -> (i32, i32, i32) {
    %c0_i32 = arith.constant 0 : i32
    %c0_i32_0 = arith.constant 0 : i32
    %c0_i32_1 = arith.constant 0 : i32
    return %arg0, %c0_i32, %c0_i32_0 : i32, i32, i32
  }
  func.func @transform_1(%arg0: i32) -> (i32, i32, i32) {
    %c0_i32 = arith.constant 0 : i32
    %c0_i32_0 = arith.constant 0 : i32
    %c0_i32_1 = arith.constant 0 : i32
    %c0_i32_2 = arith.constant 0 : i32
    return %c0_i32, %c0_i32_0, %c0_i32_1 : i32, i32, i32
  }
  func.func @transform_2(%arg0: i32) -> (i32, i32) {
    %c0_i32 = arith.constant 0 : i32
    %c0_i32_0 = arith.constant 0 : i32
    %c0_i32_1 = arith.constant 0 : i32
    return %c0_i32, %c0_i32_0 : i32, i32
  }
  func.func @transform_3(%arg0: i32) -> (i32, i32, i32) {
    %c0_i32 = arith.constant 0 : i32
    %c0_i32_0 = arith.constant 0 : i32
    %c0_i32_1 = arith.constant 0 : i32
    return %arg0, %c0_i32, %c0_i32_0 : i32, i32, i32
  }
}

</mosaic_0001>

<bundles_post_ra>
// kernel: tile.8
= control target key start
LH: loop header
LB: loop body
LE: loop exit
PB: predicated region body
PF: predicated region fallthrough
CT: control target
= control target key end

     0   :  { %s28_s0 = inlined_call_operand.vmem [shape: f32[8], index: 0, kind: input, shape index: {}]   ;;  %s29_s1 = inlined_call_operand.vmem [shape: f32[16,8], index: 1, kind: output, shape index: {}]  }
   0x1   :  { %v4_v0 = vld [vmem:[%s28_s0] ss:$0 sm:$0xff] }
   0x2   :  { %5 = vst [vmem:[%s29_s1] sm:$0xff] %v4_v0 }
   0x3   :  { %8 = vst [vmem:[%s29_s1 + $0x8] sm:$0xff] %v4_v0 }

// kernel: tile.9
= control target key start
LH: loop header
LB: loop body
LE: loop exit
PB: predicated region body
PF: predicated region fallthrough
CT: control target
= control target key end

     0   :  { %s131_s10 = smov 120   ;;  %s132_s11 = smov 104   ;;  %vm3_vm0 = vcmask 64512   ;;  %vm9_vm1 = vcmask 1048512   ;;  %vm15_vm2 = vcmask 982912   ;;  %vm21_vm3 = vcmask 917312   ;;  %s207_s0 = inlined_call_operand.vmem [shape: f32[16,8], index: 0, kind: input, shape index: {}]   ;;  %s208_s1 = inlined_call_operand.vmem [shape: f32[1,128], index: 1, kind: output, shape index: {}]  }
   0x1   :  { %v101_v0 = vld [vmem:[%s207_s0 + $0xf] sm:$0x1]   ;;  %v103_v1 = vld [vmem:[%s207_s0 + $0xd] sm:$0x1]   ;;  %v105_v2 = vld [vmem:[%s207_s0 + $0xb] sm:$0x1]  }
   0x2   :  { %7 = vrot.lane.b32.xlu0 %v101_v0, %s131_s10  ;;  %19 = vrot.lane.b32.xlu1 %v103_v1, %s132_s11  ;;  %s133_s14 = smov 88   ;;  %v102_v3 = vld [vmem:[%s207_s0 + $0xe] sm:$0x1]   ;;  %v104_v4 = vld [vmem:[%s207_s0 + $0xc] sm:$0x1]   ;;  %s134_s19 = smov 112  }
   0x3   :  { %31 = vrot.lane.b32.xlu2 %v105_v2, %s133_s14  ;;  %s135_s20 = smov 96   ;;  %v106_v5 = vld [vmem:[%s207_s0 + $0xa] sm:$0x1]   ;;  %s136_s23 = smov 80   ;;  %v107_v6 = vld [vmem:[%s207_s0 + $0x9] sm:$0x1]  }
   0x4   :  { %v108_v7 = vld [vmem:[%s207_s0 + $0x8] sm:$0x1]   ;;  %s137_s28 = smov 72   ;;  %s138_s29 = smov 64   ;;  %v109_v8 = vld [vmem:[%s207_s0 + $0x7] sm:$0x1]  }
   0x5   :  { %s139_s3 = smov 56   ;;  %v110_v9 = vld [vmem:[%s207_s0 + $0x6] sm:$0x1]   ;;  %v111_v10 = vld [vmem:[%s207_s0 + $0x5] sm:$0x1]   ;;  %s140_s8 = smov 48  }
   0x6   :  { %s141_s9 = smov 40   ;;  %v112_v11 = vld [vmem:[%s207_s0 + $0x4] sm:$0x1]   ;;  %s142_s12 = smov 32   ;;  %v113_v12 = vld [vmem:[%s207_s0 + $0x3] sm:$0x1]  }
   0x7   :  { %v114_v13 = vld [vmem:[%s207_s0 + $0x2] sm:$0x1]   ;;  %s143_s17 = smov 24   ;;  %s144_s18 = smov 16   ;;  %v115_v14 = vld [vmem:[%s207_s0 + $0x1] sm:$0x1]  }
   0x8   :  { %s145_s21 = smov 8   ;;  %v2_v15 = vld [vmem:[%s207_s0] sm:$0x1]   ;;  %vm27_vm4 = vcmask 851712   ;;  %vm33_vm5 = vcmask 786112   ;;  %vm39_vm6 = vcmask 720512  }
   0x9   :  { %4 = vst.msk [vmem:[#allocation0] sm:$0x1] %vm3_vm0, %v2_v15   ;;  %vm45_vm7 = vcmask 654912   ;;  %vm51_vm8 = vcmask 589312   ;;  %vm57_vm9 = vcmask 523712   ;;  %vm63_vm10 = vcmask 458112  }
   0xa   :  { %13 = vrot.lane.b32.xlu0 %v102_v3, %s134_s19  ;;  %25 = vrot.lane.b32.xlu1 %v104_v4, %s135_s20  ;;  %vm69_vm11 = vcmask 392512   ;;  %vm75_vm12 = vcmask 326912   ;;  %vm81_vm13 = vcmask 261312   ;;  %vm87_vm14 = vcmask 195712  }
   0xb   :  { %37 = vrot.lane.b32.xlu2 %v106_v5, %s136_s23  ;;  %vm93_vm15 = vcmask 130112  }
  0x12   :  { %43 = vrot.lane.b32.xlu0 %v107_v6, %s137_s28  ;;  %49 = vrot.lane.b32.xlu1 %v108_v7, %s138_s29 }
  0x13   :  { %55 = vrot.lane.b32.xlu2 %v109_v8, %s139_s3 }
  0x1a   :  { %61 = vrot.lane.b32.xlu0 %v110_v9, %s140_s8  ;;  %67 = vrot.lane.b32.xlu1 %v111_v10, %s141_s9 }
  0x1b   :  { %73 = vrot.lane.b32.xlu2 %v112_v11, %s142_s12 }
  0x22   :  { %79 = vrot.lane.b32.xlu0 %v113_v12, %s143_s17  ;;  %85 = vrot.lane.b32.xlu1 %v114_v13, %s144_s18 }
  0x23   :  { %91 = vrot.lane.b32.xlu2 %v115_v14, %s145_s21 }
  0x5d   :  { %v32_v16 = vpop.permute.xlu2 %31  }
  0x65   :  { %v38_v17 = vpop.permute.xlu2 %37  }
  0x6d   :  { %v56_v18 = vpop.permute.xlu2 %55  }
  0x74   :  { %v8_v19 = vpop.permute.xlu0 %7   ;;  %v20_v20 = vpop.permute.xlu1 %19  }
  0x75   :  { %10 = vst.msk [vmem:[#allocation0] sm:$0x1] %vm9_vm1, %v8_v19   ;;  %v74_v21 = vpop.permute.xlu2 %73  }
  0x7c   :  { %v14_v22 = vpop.permute.xlu0 %13   ;;  %v26_v23 = vpop.permute.xlu1 %25  }
  0x7d   :  { %16 = vst.msk [vmem:[#allocation0] sm:$0x1] %vm15_vm2, %v14_v22   ;;  %v92_v24 = vpop.permute.xlu2 %91  }
  0x7e   :  { %22 = vst.msk [vmem:[#allocation0] sm:$0x1] %vm21_vm3, %v20_v20  }
  0x7f   :  { %28 = vst.msk [vmem:[#allocation0] sm:$0x1] %vm27_vm4, %v26_v23  }
  0x80   :  { %34 = vst.msk [vmem:[#allocation0] sm:$0x1] %vm33_vm5, %v32_v16  }
  0x81   :  { %40 = vst.msk [vmem:[#allocation0] sm:$0x1] %vm39_vm6, %v38_v17  }
  0x84   :  { %v44_v25 = vpop.permute.xlu0 %43   ;;  %v50_v26 = vpop.permute.xlu1 %49  }
  0x85   :  { %46 = vst.msk [vmem:[#allocation0] sm:$0x1] %vm45_vm7, %v44_v25  }
  0x86   :  { %52 = vst.msk [vmem:[#allocation0] sm:$0x1] %vm51_vm8, %v50_v26  }
  0x87   :  { %58 = vst.msk [vmem:[#allocation0] sm:$0x1] %vm57_vm9, %v56_v18  }
  0x8c   :  { %v62_v27 = vpop.permute.xlu0 %61   ;;  %v68_v28 = vpop.permute.xlu1 %67  }
  0x8d   :  { %64 = vst.msk [vmem:[#allocation0] sm:$0x1] %vm63_vm10, %v62_v27  }
  0x8e   :  { %70 = vst.msk [vmem:[#allocation0] sm:$0x1] %vm69_vm11, %v68_v28  }
  0x8f   :  { %76 = vst.msk [vmem:[#allocation0] sm:$0x1] %vm75_vm12, %v74_v21  }
  0x94   :  { %v80_v29 = vpop.permute.xlu0 %79   ;;  %v86_v30 = vpop.permute.xlu1 %85  }
  0x95   :  { %82 = vst.msk [vmem:[#allocation0] sm:$0x1] %vm81_vm13, %v80_v29  }
  0x96   :  { %88 = vst.msk [vmem:[#allocation0] sm:$0x1] %vm87_vm14, %v86_v30  }
  0x97   :  { %94 = vst.msk [vmem:[#allocation0] sm:$0x1] %vm93_vm15, %v92_v24  }
  0x9e   :  { %v97_v31 = vld [vmem:[#allocation0] sm:$0x1] }
  0x9f   :  { %100 = vst [vmem:[%s208_s1] sm:$0x1] %v97_v31 }

// kernel: cbrp_forward.1
= control target key start
LH: loop header
LB: loop body
LE: loop exit
PB: predicated region body
PF: predicated region fallthrough
CT: control target
= control target key end

     0   :  { %s525_s12 = smov 0   ;;  %s651_s0 = inlined_call_operand.vmem [shape: f32[2,18,72], index: 0, kind: input, shape index: {}]   ;;  %s652_s1 = inlined_call_operand.vmem [shape: f32[3,72,128], index: 1, kind: input, shape index: {}]   ;;  %s653_s2 = inlined_call_operand.vmem [shape: f32[1,128], index: 2, kind: input, shape index: {}]   ;;  %s654_s3 = inlined_call_operand.vmem [shape: f32[2,8,64], index: 3, kind: output, shape index: {}]  }
   0x1 LB: > { %s445_s13 = sadd.s32 4294967295, %s500_s12   ;;  %p449_p0 = scmp.ge.s32.totalorder %s500_s12, 1  ;;  %s500_s12 = sphi %s525_s12, %s13_s12  }
   0x2   : > { %p137_p1 = scmp.lt.s32.totalorder %s500_s12, 3 }
   0x4   : > { %p138_p2 = pnand %p449_p0, %p137_p1 }
   0x5   : > { %p160_p3 = scmp.lt.s32.totalorder (!%p138_p2), %s445_s13, 1  ;;  %s502_s24 = smov (!%p138_p2), 72  }
   0x6   : > { %141 = sbr.rel (%p138_p2) target bundleno = 393 (0x189), region = 32  ;;  %s503_s25 = smov (!%p138_p2), 64  }
   0x7   : > { %s504_s26 = smov (!%p138_p2), 8  }
   0xb   : > { %v462_v0 = vld [vmem:[%s652_s1 + $0x88] sm:$0xff]  ;;  %v180_v1 = vld [vmem:[%s652_s1 + $0x40] sm:$0xff]  ;;  %v179_v3 = vld [vmem:[%s652_s1 + $0x38] sm:$0xff]  ;;  %s656_s13 = smov (!%p160_p3, %s445_s13), 1  ;;  %vm193_vm0 = vcmask 588800   ;;  %vm376_vm3 = vcmask 1040384  }
   0xc   : > { %v461_v2 = vld [vmem:[%s652_s1 + $0x80] sm:$0xff]  ;;  %204 = vmatpush.msra.mxu0 %v462_v0  ;;  %227 = vmatpush.msra.mxu1 %v180_v1  ;;  %v460_v4 = vld [vmem:[%s652_s1 + $0x78] sm:$0xff]  ;;  %v178_v5 = vld [vmem:[%s652_s1 + $0x30] sm:$0xff]  ;;  %s481_s17 = smul.u32 24, %s656_s13  ;;  %vm360_vm4 = vcmask 64512   ;;  %s451_s27 = sshll.u32 %s656_s13, 3 }
   0xd   : > { %250 = vmatpush.msra.mxu2 %v462_v0  ;;  %270 = vmatpush.msra.mxu3 %v180_v1  ;;  %v459_v6 = vld [vmem:[%s652_s1 + $0x70] sm:$0xff]  ;;  %v177_v7 = vld [vmem:[%s652_s1 + $0x28] sm:$0xff]  ;;  %v176_v9 = vld [vmem:[%s652_s1 + $0x20] sm:$0xff]  ;;  %vm390_vm5 = vcmask 523264  }
   0xe   : > { %205 = vmatpush.msra.mxu0 %v461_v2  ;;  %228 = vmatpush.msra.mxu1 %v179_v3  ;;  %v458_v8 = vld [vmem:[%s652_s1 + $0x68] sm:$0xff]  ;;  %v457_v10 = vld [vmem:[%s652_s1 + $0x60] sm:$0xff]  ;;  %v175_v11 = vld [vmem:[%s652_s1 + $0x18] sm:$0xff]  ;;  %s600_s30 = scalar_lea.vmem %s651_s0, %s481_s17 }
   0xf   : > { %251 = vmatpush.msra.mxu2 %v461_v2  ;;  %271 = vmatpush.msra.mxu3 %v179_v3  ;;  %v456_v12 = vld [vmem:[%s652_s1 + $0x58] sm:$0xff]  ;;  %v174_v13 = vld [vmem:[%s652_s1 + $0x10] sm:$0xff]  ;;  %v173_v15 = vld [vmem:[%s652_s1 + $0x8] sm:$0xff] }
  0x10   : > { %206 = vmatpush.msra.mxu0 %v460_v4  ;;  %229 = vmatpush.msra.mxu1 %v178_v5  ;;  %v455_v14 = vld [vmem:[%s652_s1 + $0x50] sm:$0xff]  ;;  %v454_v16 = vld [vmem:[%s652_s1 + $0x48] sm:$0xff]  ;;  %v172_v17 = vld [vmem:[%s652_s1] sm:$0xff] }
  0x11   : > { %252 = vmatpush.msra.mxu2 %v460_v4  ;;  %272 = vmatpush.msra.mxu3 %v178_v5  ;;  %v476_v18 = vld [vmem:[%s652_s1 + $0xd0] sm:$0xff]  ;;  %v475_v19 = vld [vmem:[%s652_s1 + $0xc8] sm:$0xff]  ;;  %v474_v22 = vld [vmem:[%s652_s1 + $0xc0] sm:$0xff] }
  0x12   : > { %207 = vmatpush.msra.mxu0 %v459_v6  ;;  %230 = vmatpush.msra.mxu1 %v177_v7  ;;  %v452_v20 = vld [vmem:[%s600_s30 + $0x1] ss:$2 sm:$0xff]  ;;  %v169_v21 = vld [vmem:[%s600_s30] ss:$2 sm:$0xff]  ;;  %v473_v24 = vld [vmem:[%s652_s1 + $0xb8] sm:$0xff] }
  0x13   : > { %253 = vmatpush.msra.mxu2 %v459_v6  ;;  %273 = vmatpush.msra.mxu3 %v177_v7  ;;  %v453_v23 = vld [vmem:[%s600_s30 + $0x2] ss:$2 sm:$0xff]  ;;  %v469_v28 = vld [vmem:[%s652_s1 + $0x98] sm:$0xff]  ;;  %v467_v30 = vld [vmem:[%s600_s30 + $0x3] ss:$2 sm:$0xff]  ;;  %s168_s30 = scalar_lea.vmem %s654_s3, %s451_s27 }
  0x14   : > { %208 = vmatpush.msra.mxu0 %v458_v8  ;;  %231 = vmatpush.msra.mxu1 %v176_v9  ;;  %v472_v25 = vld [vmem:[%s652_s1 + $0xb0] sm:$0xff]  ;;  %v471_v26 = vld [vmem:[%s652_s1 + $0xa8] sm:$0xff]  ;;  %v470_v27 = vld [vmem:[%s652_s1 + $0xa0] sm:$0xff] }
  0x15   : > { %254 = vmatpush.msra.mxu2 %v458_v8  ;;  %274 = vmatpush.msra.mxu3 %v176_v9  ;;  %v468_v29 = vld [vmem:[%s652_s1 + $0x90] sm:$0xff]  ;;  %v493_v37 = vld [vmem:[%s653_s2] ss:$0 sm:$0xff] }
  0x16   : > { %209 = vmatpush.msra.mxu0 %v457_v10  ;;  %232 = vmatpush.msra.mxu1 %v175_v11 }
  0x17   : > { %255 = vmatpush.msra.mxu2 %v457_v10  ;;  %275 = vmatpush.msra.mxu3 %v175_v11 }
  0x18   : > { %210 = vmatpush.msra.mxu0 %v456_v12  ;;  %233 = vmatpush.msra.mxu1 %v174_v13 }
  0x19   : > { %256 = vmatpush.msra.mxu2 %v456_v12  ;;  %276 = vmatpush.msra.mxu3 %v174_v13 }
  0x1a   : > { %211 = vmatpush.msra.mxu0 %v455_v14  ;;  %234 = vmatpush.msra.mxu1 %v173_v15 }
  0x1b   : > { %257 = vmatpush.msra.mxu2 %v455_v14  ;;  %277 = vmatpush.msra.mxu3 %v173_v15 }
  0x1c   : > { %212 = vmatpush.msra.mxu0 %v454_v16  ;;  %235 = vmatpush.msra.mxu1 %v172_v17 }
  0x1d   : > { %258 = vmatpush.msra.mxu2 %v454_v16  ;;  %278 = vmatpush.msra.mxu3 %v172_v17 }
  0x1e   : > { %302 = vmatpush.msrb.mxu0 %v476_v18  ;;  %326 = vmatpush.msrb.mxu1 %v476_v18 }
  0x1f   : > { %463 = vmatmul.msk.f32.vlgmr.msra.gmra.mxu0 %vm193_vm0, %v452_v20  ;;  %464 = vmatmul.msk.f32.vlgmr.msra.gmra.mxu1 %vm193_vm0, %v169_v21 }
  0x20   : > { %303 = vmatpush.msrb.mxu0 %v475_v19  ;;  %327 = vmatpush.msrb.mxu1 %v475_v19 }
  0x21   : > { %465 = vmatmul.msk.f32.vlgmr.msra.gmra.mxu2 %vm193_vm0, %v453_v23  ;;  %466 = vmatmul.msk.f32.vlgmr.msra.gmra.mxu3 %vm193_vm0, %v452_v20 }
  0x22   : > { %304 = vmatpush.msrb.mxu0 %v474_v22  ;;  %328 = vmatpush.msrb.mxu1 %v474_v22 }
  0x24   : > { %305 = vmatpush.msrb.mxu0 %v473_v24  ;;  %329 = vmatpush.msrb.mxu1 %v473_v24 }
  0x26   : > { %306 = vmatpush.msrb.mxu0 %v472_v25  ;;  %330 = vmatpush.msrb.mxu1 %v472_v25 }
  0x28   : > { %307 = vmatpush.msrb.mxu0 %v471_v26  ;;  %331 = vmatpush.msrb.mxu1 %v471_v26 }
  0x2a   : > { %308 = vmatpush.msrb.mxu0 %v470_v27  ;;  %332 = vmatpush.msrb.mxu1 %v470_v27 }
  0x2c   : > { %309 = vmatpush.msrb.mxu0 %v469_v28  ;;  %333 = vmatpush.msrb.mxu1 %v469_v28 }
  0x2e   : > { %310 = vmatpush.msrb.mxu0 %v468_v29  ;;  %334 = vmatpush.msrb.mxu1 %v468_v29 }
  0x2f   : > { %477 = vmatmul.msk.f32.vlgmr.msrb.gmra.mxu0 %vm193_vm0, %v453_v23  ;;  %478 = vmatmul.msk.f32.vlgmr.msrb.gmra.mxu1 %vm193_vm0, %v467_v30 }
  0x9c   : > { %v214_v31 = vpop.f32.mrf.mxu0  ;;  %v237_v32 = vpop.f32.mrf.mxu1 }
  0x9d   : > { %v238_v36 = vadd.f32 %v237_v32, %v214_v31 }
  0xa4   : > { %v260_v33 = vpop.f32.mrf.mxu2  ;;  %v280_v34 = vpop.f32.mrf.mxu3 }
  0xa5   : > { %v281_v35 = vadd.f32 %v280_v34, %v260_v33 }
  0xac   : > { %v312_v38 = vpop.f32.mrf.mxu0  ;;  %v336_v39 = vpop.f32.mrf.mxu1 }
  0xad   : > { %v315_v40 = vadd.f32 %v312_v38, %v238_v36  ;;  %v339_v41 = vadd.f32 %v336_v39, %v281_v35 }
  0xaf   : > { %v344_v42 = vadd.f32 %v493_v37, %v315_v40  ;;  %v348_v43 = vadd.f32 %v493_v37, %v339_v41 }
  0xb1   : > { %v350_v44 = vmul.f32 0.01, %v348_v43  ;;  %vm349_vm1 = vcmp.ge.f32.partialorder %v348_v43, 0.0  ;;  %vm345_vm2 = vcmp.ge.f32.partialorder %v344_v42, 0.0  ;;  %v346_v45 = vmul.f32 0.01, %v344_v42 }
  0xb3   : > { %v351_v46 = vsel %vm349_vm1, %v348_v43, %v350_v44  ;;  %v347_v47 = vsel %vm345_vm2, %v344_v42, %v346_v45 }
  0xb4   : > { %369 = vrot.lane.b32.xlu2 %v351_v46, %s502_s24  ;;  %357 = vrot.lane.b32.xlu1 %v347_v47, %s502_s24  ;;  %v374_v48 = vrot.slane %v351_v46, 7 }
  0xb6   : > { %378 = vrot.lane.b32.xlu0 %v374_v48, %s503_s25  ;;  %v377_v62 = vsel %vm376_vm3, -3.4028235e+38, %v374_v48 }
  0xbc   : > { %365 = vrot.lane.b32.xlu1 %v351_v46, %s503_s25 }
  0xbe   : > { %353 = vrot.lane.b32.xlu0 %v347_v47, %s503_s25 }
 0x10e   : > { %v370_v56 = vpop.permute.xlu2 %369 }
 0x10f   : > { %v372_v60 = vsel %vm360_vm4, -3.4028235e+38, %v370_v56 }
 0x126   : > { %v358_v51 = vpop.permute.xlu1 %357 }
 0x127   : > { %v361_v54 = vsel %vm360_vm4, -3.4028235e+38, %v358_v51 }
 0x128   : > { %v379_v49 = vpop.permute.xlu0 %378 }
 0x129   : > { %v381_v50 = vsel %vm376_vm3, -3.4028235e+38, %v379_v49 }
 0x12a   : > { %385 = vrot.lane.b32.xlu2 %v381_v50, %s504_s26 }
 0x12e   : > { %v366_v58 = vpop.permute.xlu1 %365 }
 0x130   : > { %v354_v52 = vpop.permute.xlu0 %353 }
 0x131   : > { %v356_v53 = vmax.f32 %v347_v47, %v354_v52 }
 0x133   : > { %v362_v55 = vmax.f32 %v356_v53, %v361_v54 }
 0x135   : > { %v363_v57 = vmax.f32 %v362_v55, %v351_v46 }
 0x137   : > { %v368_v59 = vmax.f32 %v363_v57, %v366_v58 }
 0x139   : > { %v373_v61 = vmax.f32 %v368_v59, %v372_v60 }
 0x13b   : > { %v382_v63 = vmax.f32 %v373_v61, %v377_v62 }
 0x13d   : > { %v383_v0 = vmax.f32 %v382_v63, %v381_v50 }
 0x184   : > { %v386_v1 = vpop.permute.xlu2 %385 }
 0x185   : > { %v388_v2 = vsel %vm360_vm4, -3.4028235e+38, %v386_v1 }
 0x186   : > { %v389_v3 = vmax.f32 %v383_v0, %v388_v2 }
 0x188   : > { %391 = vst.msk [vmem:[%s168_s30] sm:$0xff] %vm390_vm5, %v389_v3 }
 0x189 PF: > { %s13_s12 = sadd.s32 1, %s500_s12  }
 0x18a   : > { %p10_p4 = scmp.ge.s32.totalorder %s13_s12, 4  }
 0x18c   :  { %12 = sbr.rel (!%p10_p4) target bundleno = 1 (0x1), region = 67 }

</bundles_post_ra>
